<compile_context>
chip_gen: v5e
topology: v5e:2x2
jax: 0.10.0
libtpu: 0.0.40
codegen_flags: <defaults>
</compile_context>

<pallas_src>
import functools

import jax
import jax.numpy as jnp
from jax.experimental import pallas as pl
from jax.experimental.pallas import tpu as pltpu

LN_EPS = 1e-5  # PyTorch nn.LayerNorm default


def _round_up(x, m):
    return (x + m - 1) // m * m


def _cdiv(a, b):
    return (a + b - 1) // b


def _bpe(dt):
    return jnp.dtype(dt).itemsize


def _vmem_capacity_bytes():
    try:
        return int(pltpu.get_tpu_info().vmem_capacity_bytes)
    except Exception:
        return 64 << 20  # conservative fallback (v7x per-TensorCore VMEM)


def _linear_layer_kernel(x_ref, g_ref, b_ref, w_ref, bias_ref, o_ref, xln_ref,
                         *, layer_norm: bool, relu: bool, d_in: int, tn: int):
    """One (tm, tn) output tile.

    Grid = (row tiles i, output-column tiles j).  The LayerNorm of the row tile is computed
    once at j == 0 into `xln_ref` (MXU-operand dtype) and reused for every output-column tile.
    NOTE: this reuse requires j to be the innermost, in-order ("arbitrary") grid axis; do not
    reorder the grid or mark j "parallel".

    x_ref    : (tm, D_in_p)    rows of the flattened (zero-padded) input
    g_ref    : (1, D_in_p)     LayerNorm gamma (zero-padded)
    b_ref    : (1, D_in_p)     LayerNorm beta  (zero-padded)
    w_ref    : (D_in_p, tn)    weight^T column tile (zero-padded rows/cols)
    bias_ref : (1, D_out_p)    full bias row, VMEM-resident; sliced per j in-kernel
    o_ref    : (tm, tn)
    xln_ref  : (tm, D_in_p)    VMEM scratch holding the normalized rows (MXU dtype)
    """
    j = pl.program_id(1)

    @pl.when(j == 0)
    def _compute_ln():
        x = x_ref[...].astype(jnp.float32)
        if layer_norm:
            d_pad = x.shape[-1]
            if d_pad != d_in:
                lane = jax.lax.broadcasted_iota(jnp.int32, x.shape, dimension=1)
                valid = lane < d_in
                xs = jnp.where(valid, x, 0.0)
            else:
                valid = None
                xs = x
            inv_d = jnp.float32(1.0 / d_in)
            mean = jnp.sum(xs, axis=-1, keepdims=True) * inv_d
            centered = x - mean
            if valid is not None:
                centered = jnp.where(valid, centered, 0.0)
            var = jnp.sum(centered * centered, axis=-1, keepdims=True) * inv_d
            normed = centered * jax.lax.rsqrt(var + LN_EPS)           # EUP rsqrt
            # Padded lanes: gamma = beta = 0 -> exact zeros feed the (zero) weight rows.
            x = normed * g_ref[...].astype(jnp.float32) + b_ref[...].astype(jnp.float32)
        # Dropout is identity in eval mode.
        # TODO(synk): training-mode dropout (pltpu.prng_seed + prng_random_bits mask).
        xln_ref[...] = x.astype(xln_ref.dtype)

    # MXU matmul in the prepared operand dtype (bf16 weights -> full-rate path), f32 accumulation.
    y = jnp.dot(xln_ref[...], w_ref[...], preferred_element_type=jnp.float32)
    col0 = pl.multiple_of(j * tn, 128)                                # 128-aligned bias slice
    y = y + bias_ref[:, pl.ds(col0, tn)].astype(jnp.float32)
    if relu:
        y = jnp.maximum(y, 0.0)
    o_ref[...] = y.astype(o_ref.dtype)


def prepare_linear_layer_params(gamma, beta, weight, bias, *,
                                mxu_dtype=None, tn=None, vmem_cap=None):
    """One-time (out of the hot path) weight transpose / pad / cast.

    weight: (D_out, D_in), PyTorch convention.  Chooses the output-column tile `tn` from the
    device VMEM capacity (weight-resident single-step path when the whole weight fits).
    """
    D_out, D_in = weight.shape
    if gamma is None:
        gamma = jnp.ones((D_in,), dtype=weight.dtype)
    if beta is None:
        beta = jnp.zeros((D_in,), dtype=weight.dtype)
    mxu_dtype = jnp.dtype(mxu_dtype) if mxu_dtype is not None else jnp.dtype(weight.dtype)
    vmem_cap = int(vmem_cap) if vmem_cap is not None else _vmem_capacity_bytes()

    D_in_p = _round_up(D_in, 128)
    d_out_128 = _round_up(D_out, 128)
    bpe_w = _bpe(mxu_dtype)

    if tn is None:
        if D_in_p * d_out_128 * bpe_w <= vmem_cap // 4:
            tn = d_out_128          # weight resident: single j step, weight fetched once
        else:
            tn = 128
            for cand in (512, 256, 128):
                if d_out_128 % cand == 0 and 2 * D_in_p * cand * bpe_w <= vmem_cap // 4:
                    tn = cand
                    break
    else:
        tn = max(128, _round_up(int(tn), 128))
    D_out_p = _round_up(D_out, tn)

    w_t = weight.T.astype(mxu_dtype)
    if (D_in_p, D_out_p) != (D_in, D_out):
        w_t = jnp.pad(w_t, ((0, D_in_p - D_in), (0, D_out_p - D_out)))
    g2d = gamma.reshape(1, D_in)
    b2d = beta.reshape(1, D_in)
    if D_in_p != D_in:
        g2d = jnp.pad(g2d, ((0, 0), (0, D_in_p - D_in)))
        b2d = jnp.pad(b2d, ((0, 0), (0, D_in_p - D_in)))
    bias2d = bias.reshape(1, D_out)
    if D_out_p != D_out:
        bias2d = jnp.pad(bias2d, ((0, 0), (0, D_out_p - D_out)))

    return dict(w_t=w_t, gamma=g2d, beta=b2d, bias=bias2d,
                d_in=D_in, d_out=D_out, d_in_p=D_in_p, d_out_p=D_out_p,
                tn=tn, vmem_cap=vmem_cap)


def linear_layer_apply(x, params, *, layer_norm=True, relu=True, tm=None):
    """x: (N, L, D_in) -> (N, L, D_out), using pre-prepared params."""
    N, L, D_in = x.shape
    assert D_in == params["d_in"], (D_in, params["d_in"])
    M = N * L
    D_in_p, D_out, D_out_p = params["d_in_p"], params["d_out"], params["d_out_p"]
    tn, vmem_cap, w_t = params["tn"], params["vmem_cap"], params["w_t"]
    mxu_dtype = w_t.dtype
    j_steps = D_out_p // tn

    bpe_x = _bpe(x.dtype)
    bpe_w = _bpe(mxu_dtype)
    bpe_o = _bpe(x.dtype)

    budget = vmem_cap * 3 // 4
    fixed = 2 * D_in_p * tn * bpe_w + (2 * D_in_p + D_out_p) * 4 * 2   # weights + small residents

    def footprint(tm_, x_bufs):
        return (x_bufs * tm_ * D_in_p * bpe_x        # pipelined x row tile
                + tm_ * D_in_p * _bpe(mxu_dtype)     # LN scratch
                + 2 * tm_ * tn * bpe_o               # pipelined output tile
                + fixed)

    if tm is None:
        tm = 16
        for cand in (1024, 512, 256, 128, 64, 32, 16):
            if footprint(cand, 2) <= budget:
                tm = cand
                break
        m16 = _round_up(max(M, 1), 16)
        n_tiles = _cdiv(m16, tm)
        tm = _round_up(_cdiv(M, n_tiles), 16)        # rebalance over the true M
        # v7x megacore: give both TensorCores a row tile when it costs no extra weight traffic.
        if n_tiles == 1 and j_steps == 1 and M >= 32:
            tm = _round_up(_cdiv(M, 2), 16)
    else:
        tm = max(16, _round_up(int(tm), 16))

    M_p = _round_up(M, tm)
    n_row_tiles = M_p // tm

    # Deepen the x pipeline only when its refetch at row-tile boundaries is actually exposed.
    use_deep_x = (j_steps > 1 and n_row_tiles > 1 and footprint(tm, 3) <= budget)
    if use_deep_x:
        x_spec = pl.BlockSpec((tm, D_in_p), lambda i, j: (i, 0),
                              pipeline_mode=pl.Buffered(3))
    else:
        x_spec = pl.BlockSpec((tm, D_in_p), lambda i, j: (i, 0))

    x2d = x.reshape(M, D_in)
    if M_p != M or D_in_p != D_in:
        x2d = jnp.pad(x2d, ((0, M_p - M), (0, D_in_p - D_in)))
    # TODO(synk): for very large activations, handle the ragged last row tile with a
    # scalar-prefetched row count + masked store instead of padding the whole tensor.

    w_fetches = 1 if j_steps == 1 else n_row_tiles * j_steps
    cost = pl.CostEstimate(
        flops=2 * M * D_in * D_out,
        transcendentals=M if layer_norm else 0,
        bytes_accessed=int(M_p * D_in_p * bpe_x
                           + w_fetches * D_in_p * tn * bpe_w
                           + M_p * D_out_p * bpe_o
                           + (2 * D_in_p + D_out_p) * 4),
    )

    vmem_limit = int(min(vmem_cap - (2 << 20), vmem_cap * 0.92))
    vmem_limit = max(min(vmem_limit, 128 << 20), 16 << 20)

    kernel = functools.partial(_linear_layer_kernel, layer_norm=layer_norm,
                               relu=relu, d_in=D_in, tn=tn)

    out2d = pl.pallas_call(
        kernel,
        out_shape=jax.ShapeDtypeStruct((M_p, D_out_p), x.dtype),
        grid_spec=pltpu.PrefetchScalarGridSpec(
            num_scalar_prefetch=0,
            grid=(n_row_tiles, j_steps),
            in_specs=[
                x_spec,                                             # x rows
                pl.BlockSpec((1, D_in_p), lambda i, j: (0, 0)),     # gamma (resident)
                pl.BlockSpec((1, D_in_p), lambda i, j: (0, 0)),     # beta  (resident)
                pl.BlockSpec((D_in_p, tn), lambda i, j: (0, j)),    # weight^T column tile
                pl.BlockSpec((1, D_out_p), lambda i, j: (0, 0)),    # bias (resident)
            ],
            out_specs=pl.BlockSpec((tm, tn), lambda i, j: (i, j)),
            scratch_shapes=[pltpu.VMEM((tm, D_in_p), mxu_dtype)],   # normalized rows
        ),
        compiler_params=pltpu.CompilerParams(
            # Row axis shards across TensorCores (v7x megacore).  The j axis reuses the
            # per-row-tile LN scratch and MUST stay innermost + "arbitrary".
            dimension_semantics=("parallel", "arbitrary"),
            vmem_limit_bytes=vmem_limit,
        ),
        cost_estimate=cost,
    )(x2d, params["gamma"], params["beta"], w_t, params["bias"])

    if M_p != M or D_out_p != D_out:
        out2d = out2d[:M, :D_out]
    return out2d.reshape(N, L, D_out)


def linear_layer_forward(x, gamma, beta, weight, bias, *,
                         layer_norm=True, relu=True, mxu_dtype=None, tm=None, tn=None):
    """Convenience wrapper (prepare + apply).  In a real model, hoist
    prepare_linear_layer_params() out of the per-step hot path."""
    params = prepare_linear_layer_params(gamma, beta, weight, bias,
                                         mxu_dtype=mxu_dtype, tn=tn)
    return linear_layer_apply(x, params, layer_norm=layer_norm, relu=relu, tm=tm)


def _reference(x, gamma, beta, weight, bias, *, layer_norm=True, relu=True):
    xf = x.astype(jnp.float32)
    if layer_norm:
        mean = jnp.mean(xf, axis=-1, keepdims=True)
        var = jnp.mean((xf - mean) ** 2, axis=-1, keepdims=True)
        xf = (xf - mean) / jnp.sqrt(var + LN_EPS)
        xf = xf * gamma.astype(jnp.float32) + beta.astype(jnp.float32)
    y = xf @ weight.T.astype(jnp.float32) + bias.astype(jnp.float32)
    if relu:
        y = jnp.maximum(y, 0.0)
    return y.astype(x.dtype)


if __name__ == "__main__":
    key = jax.random.PRNGKey(0)

    def make(key, N, L, Di, Do, dtype=jnp.float32):
        kx, kw, kb, kg, kbt, key = jax.random.split(key, 6)
        x = jax.random.normal(kx, (N, L, Di), dtype=dtype)
        gamma = 1.0 + 0.1 * jax.random.normal(kg, (Di,), dtype=dtype)
        beta = 0.1 * jax.random.normal(kbt, (Di,), dtype=dtype)
        bound = 1.0 / float(Di) ** 0.5
        weight = jax.random.uniform(kw, (Do, Di), dtype, -bound, bound)
        bias = jax.random.uniform(kb, (Do,), dtype, -bound, bound)
        return key, x, gamma, beta, weight, bias

    # --- Test 1: module-default shapes (N, L, D) = (2, 8, 32), LinearLayer(32, 32) ----------
    key, x1, g1, b1, w1, bb1 = make(key, 2, 8, 32, 32)
    p1 = prepare_linear_layer_params(g1, b1, w1, bb1)
    out1 = jax.block_until_ready(linear_layer_apply(x1, p1, layer_norm=True, relu=True))
    ref1 = _reference(x1, g1, b1, w1, bb1)
    assert out1.shape == (2, 8, 32), out1.shape
    assert jnp.allclose(out1, ref1, atol=1e-5, rtol=1e-5), float(jnp.max(jnp.abs(out1 - ref1)))

    # --- Test 2: non-divisible M / non-128 features -> pad + slice path ----------------------
    key, x2, g2, b2, w2, bb2 = make(key, 3, 37, 48, 96)
    p2 = prepare_linear_layer_params(g2, b2, w2, bb2)
    out2 = jax.block_until_ready(linear_layer_apply(x2, p2, tm=64))
    ref2 = _reference(x2, g2, b2, w2, bb2)
    assert out2.shape == (3, 37, 96), out2.shape
    assert jnp.allclose(out2, ref2, atol=1e-5, rtol=1e-5), float(jnp.max(jnp.abs(out2 - ref2)))

    # --- Test 3: multiple row tiles AND multiple output-column tiles (Buffered(3) x path) ----
    key, x3, g3, b3, w3, bb3 = make(key, 2, 64, 64, 256)
    p3 = prepare_linear_layer_params(g3, b3, w3, bb3, tn=128)
    out3 = jax.block_until_ready(linear_layer_apply(x3, p3, tm=32))
    ref3 = _reference(x3, g3, b3, w3, bb3)
    assert out3.shape == (2, 64, 256), out3.shape
    assert jnp.allclose(out3, ref3, atol=1e-5, rtol=1e-5), float(jnp.max(jnp.abs(out3 - ref3)))

    # --- Test 4: explicit bf16 MXU-operand knob (f32 LN + f32 accumulation) ------------------
    p4 = prepare_linear_layer_params(g1, b1, w1, bb1, mxu_dtype=jnp.bfloat16)
    out4 = jax.block_until_ready(linear_layer_apply(x1, p4))
    assert jnp.allclose(out4, ref1, atol=3e-2, rtol=3e-2), float(jnp.max(jnp.abs(out4 - ref1)))

    # --- Test 5: layer_norm=False, relu=False (plain Linear) ---------------------------------
    p5 = prepare_linear_layer_params(None, None, w1, bb1)
    out5 = jax.block_until_ready(linear_layer_apply(x1, p5, layer_norm=False, relu=False))
    ref5 = _reference(x1, None, None, w1, bb1, layer_norm=False, relu=False)
    assert jnp.allclose(out5, ref5, atol=1e-5, rtol=1e-5), float(jnp.max(jnp.abs(out5 - ref5)))

    print("KERNEL_OK")
</pallas_src>

<mosaic_0001>
module attributes {stable_mosaic.version = 11 : i64} {
  func.func @_linear_layer_kernel(%arg0: i32, %arg1: i32, %arg2: memref<16x128xf32, #tpu.memory_space<vmem>>, %arg3: memref<1x128xf32, #tpu.memory_space<vmem>>, %arg4: memref<1x128xf32, #tpu.memory_space<vmem>>, %arg5: memref<128x128xf32, #tpu.memory_space<vmem>>, %arg6: memref<1x128xf32, #tpu.memory_space<vmem>>, %arg7: memref<16x128xf32, #tpu.memory_space<vmem>>, %arg8: memref<16x128xf32, #tpu.memory_space<vmem>>) attributes {dimension_semantics = [#tpu.dimension_semantics<parallel>, #tpu.dimension_semantics<arbitrary>], iteration_bounds = array<i64: 1, 1>, scalar_prefetch = 0 : i64, scratch_operands = 1 : i64, tpu.core_type = #tpu.core_type<tc>, window_params = [{transform_indices = @transform_0, window_bounds = array<i64: 16, 128>}, {pipeline_mode = #tpu.pipeline_mode<synchronous>, transform_indices = @transform_1, window_bounds = array<i64: 1, 128>}, {pipeline_mode = #tpu.pipeline_mode<synchronous>, transform_indices = @transform_2, window_bounds = array<i64: 1, 128>}, {transform_indices = @transform_3, window_bounds = array<i64: 128, 128>}, {pipeline_mode = #tpu.pipeline_mode<synchronous>, transform_indices = @transform_4, window_bounds = array<i64: 1, 128>}, {transform_indices = @transform_5, window_bounds = array<i64: 16, 128>}]} {
    %c0_i32 = arith.constant 0 : i32
    %0 = arith.cmpi eq, %arg1, %c0_i32 : i32
    %1 = arith.extui %0 : i1 to i32
    %c0_i32_0 = arith.constant 0 : i32
    %2 = arith.cmpi ne, %1, %c0_i32_0 : i32
    scf.if %2 {
      %c0_8 = arith.constant 0 : index
      %c0_9 = arith.constant 0 : index
      %15 = vector.load %arg2[%c0_8, %c0_9] : memref<16x128xf32, #tpu.memory_space<vmem>>, vector<16x128xf32>
      %16 = tpu.iota {dimensions = array<i32: 1>} : vector<16x128xi32>
      %c32_i32 = arith.constant 32 : i32
      %17 = vector.broadcast %c32_i32 : i32 to vector<16x128xi32>
      %18 = arith.cmpi slt, %16, %17 : vector<16x128xi32>
      %cst_10 = arith.constant 0.000000e+00 : f32
      %19 = vector.broadcast %cst_10 : f32 to vector<16x128xf32>
      %20 = arith.select %18, %15, %19 : vector<16x128xi1>, vector<16x128xf32>
      %cst_11 = arith.constant dense<0.000000e+00> : vector<16xf32>
      %21 = vector.multi_reduction <add>, %20, %cst_11 [1] : vector<16x128xf32> to vector<16xf32>
      %22 = vector.shape_cast %21 : vector<16xf32> to vector<16x1xf32>
      %cst_12 = arith.constant 3.125000e-02 : f32
      %23 = vector.broadcast %cst_12 : f32 to vector<16x1xf32>
      %24 = arith.mulf %22, %23 : vector<16x1xf32>
      %25 = vector.broadcast %24 : vector<16x1xf32> to vector<16x128xf32>
      %26 = arith.subf %15, %25 : vector<16x128xf32>
      %cst_13 = arith.constant 0.000000e+00 : f32
      %27 = vector.broadcast %cst_13 : f32 to vector<16x128xf32>
      %28 = arith.select %18, %26, %27 : vector<16x128xi1>, vector<16x128xf32>
      %29 = arith.mulf %28, %28 : vector<16x128xf32>
      %cst_14 = arith.constant dense<0.000000e+00> : vector<16xf32>
      %30 = vector.multi_reduction <add>, %29, %cst_14 [1] : vector<16x128xf32> to vector<16xf32>
      %31 = vector.shape_cast %30 : vector<16xf32> to vector<16x1xf32>
      %cst_15 = arith.constant 3.125000e-02 : f32
      %32 = vector.broadcast %cst_15 : f32 to vector<16x1xf32>
      %33 = arith.mulf %31, %32 : vector<16x1xf32>
      %cst_16 = arith.constant 9.99999974E-6 : f32
      %34 = vector.broadcast %cst_16 : f32 to vector<16x1xf32>
      %35 = arith.addf %33, %34 : vector<16x1xf32>
      %36 = math.rsqrt %35 : vector<16x1xf32>
      %37 = vector.broadcast %36 : vector<16x1xf32> to vector<16x128xf32>
      %38 = arith.mulf %28, %37 : vector<16x128xf32>
      %c0_17 = arith.constant 0 : index
      %c0_18 = arith.constant 0 : index
      %39 = vector.load %arg3[%c0_17, %c0_18] : memref<1x128xf32, #tpu.memory_space<vmem>>, vector<1x128xf32>
      %40 = vector.broadcast %39 : vector<1x128xf32> to vector<16x128xf32>
      %41 = arith.mulf %38, %40 : vector<16x128xf32>
      %c0_19 = arith.constant 0 : index
      %c0_20 = arith.constant 0 : index
      %42 = vector.load %arg4[%c0_19, %c0_20] : memref<1x128xf32, #tpu.memory_space<vmem>>, vector<1x128xf32>
      %43 = vector.broadcast %42 : vector<1x128xf32> to vector<16x128xf32>
      %44 = arith.addf %41, %43 : vector<16x128xf32>
      %c0_21 = arith.constant 0 : index
      %c0_22 = arith.constant 0 : index
      %45 = vector.load %arg8[%c0_21, %c0_22] : memref<16x128xf32, #tpu.memory_space<vmem>>, vector<16x128xf32>
      tpu.vector_store %arg8[%c0_21, %c0_22], %44 {strides = array<i32>} : memref<16x128xf32, #tpu.memory_space<vmem>>, vector<16x128xf32>,
    } else {
    }
    %c0 = arith.constant 0 : index
    %c0_1 = arith.constant 0 : index
    %3 = vector.load %arg8[%c0, %c0_1] : memref<16x128xf32, #tpu.memory_space<vmem>>, vector<16x128xf32>
    %c0_2 = arith.constant 0 : index
    %c0_3 = arith.constant 0 : index
    %4 = vector.load %arg5[%c0_2, %c0_3] : memref<128x128xf32, #tpu.memory_space<vmem>>, vector<128x128xf32>
    %cst = arith.constant dense<0.000000e+00> : vector<16x128xf32>
    %5 = tpu.matmul %3, %4, %cst {dimension_numbers = #tpu.dot_dimension_numbers<[1], [0], [0], [1], [0, 0, 1, 1], [], []>} : vector<16x128xf32>, vector<128x128xf32>, vector<16x128xf32> -> vector<16x128xf32>
    %c128_i32 = arith.constant 128 : i32
    %6 = arith.muli %arg1, %c128_i32 : i32
    %7 = tpu.assume_multiple %6, 128 : i32
    %c0_4 = arith.constant 0 : index
    %8 = arith.index_cast %7 : i32 to index
    %9 = vector.load %arg6[%c0_4, %8] : memref<1x128xf32, #tpu.memory_space<vmem>>, vector<1x128xf32>
    %10 = vector.broadcast %9 : vector<1x128xf32> to vector<16x128xf32>
    %11 = arith.addf %5, %10 : vector<16x128xf32>
    %cst_5 = arith.constant 0.000000e+00 : f32
    %12 = vector.broadcast %cst_5 : f32 to vector<16x128xf32>
    %13 = arith.maximumf %11, %12 : vector<16x128xf32>
    %c0_6 = arith.constant 0 : index
    %c0_7 = arith.constant 0 : index
    %14 = vector.load %arg7[%c0_6, %c0_7] : memref<16x128xf32, #tpu.memory_space<vmem>>, vector<16x128xf32>
    tpu.vector_store %arg7[%c0_6, %c0_7], %13 {strides = array<i32>} : memref<16x128xf32, #tpu.memory_space<vmem>>, vector<16x128xf32>,
    return
  }
  func.func @transform_0(%arg0: i32, %arg1: i32) -> (i32, i32) {
    %c0_i32 = arith.constant 0 : i32
    %c0_i32_0 = arith.constant 0 : i32
    return %arg0, %c0_i32 : i32, i32
  }
  func.func @transform_1(%arg0: i32, %arg1: i32) -> (i32, i32) {
    %c0_i32 = arith.constant 0 : i32
    %c0_i32_0 = arith.constant 0 : i32
    %c0_i32_1 = arith.constant 0 : i32
    return %c0_i32, %c0_i32_0 : i32, i32
  }
  func.func @transform_2(%arg0: i32, %arg1: i32) -> (i32, i32) {
    %c0_i32 = arith.constant 0 : i32
    %c0_i32_0 = arith.constant 0 : i32
    %c0_i32_1 = arith.constant 0 : i32
    return %c0_i32, %c0_i32_0 : i32, i32
  }
  func.func @transform_3(%arg0: i32, %arg1: i32) -> (i32, i32) {
    %c0_i32 = arith.constant 0 : i32
    %c0_i32_0 = arith.constant 0 : i32
    return %c0_i32, %arg1 : i32, i32
  }
  func.func @transform_4(%arg0: i32, %arg1: i32) -> (i32, i32) {
    %c0_i32 = arith.constant 0 : i32
    %c0_i32_0 = arith.constant 0 : i32
    %c0_i32_1 = arith.constant 0 : i32
    return %c0_i32, %c0_i32_0 : i32, i32
  }
  func.func @transform_5(%arg0: i32, %arg1: i32) -> (i32, i32) {
    %c0_i32 = arith.constant 0 : i32
    return %arg0, %arg1 : i32, i32
  }
}

</mosaic_0001>

<bundles_post_ra>
// kernel: tpu_custom_call.1
= control target key start
LH: loop header
LB: loop body
LE: loop exit
PB: predicated region body
PF: predicated region fallthrough
CT: control target
= control target key end

     0   :  { %10 = vsyncpa [#allocation4], 0  ;;  %s415_s0 = inlined_call_operand.hbm [shape: f32[16,128], index: 0, kind: input, shape index: {}]   ;;  %s416_s1 = inlined_call_operand.hbm [shape: f32[1,128], index: 1, kind: input, shape index: {}]   ;;  %s417_s2 = inlined_call_operand.vmem [shape: f32[1,128], index: 2, kind: input, shape index: {}]   ;;  %s418_s3 = inlined_call_operand.hbm [shape: f32[128,128], index: 3, kind: input, shape index: {}]   ;;  %s419_s4 = inlined_call_operand.vmem [shape: f32[1,128], index: 4, kind: input, shape index: {}]   ;;  %s420_s5 = inlined_call_operand.hbm [shape: f32[16,128], index: 5, kind: output, shape index: {}]  }
   0x1   :  { %11 = vsyncpa [#allocation7], 0  ;;  %s31_s20 = sshll.u32 %s416_s1, 4  ;;  %s32_s20 = int_to_ptr.hbm [resolvable:$true] %s31_s20 }
   0x2   :  { %12 = vsyncpa [#allocation5], 0  ;;  %s338_s21 = smov [#allocation6]   ;;  %s17_s25 = sshll.u32 %s415_s0, 4  ;;  %s18_s25 = int_to_ptr.hbm [resolvable:$true] %s17_s25 }
   0x3   :  { %s33_s22 = sshll.u32 %s338_s21, 4  ;;  %s339_s26 = smov [#allocation3]   ;;  %s34_s22 = int_to_ptr.vmem [resolvable:$true] %s33_s22 }
   0x4   :  { %36 = dma.hbm_to_vmem [thread:$0]  %s32_s20, 16, %s34_s22, [#allocation7]  }
   0x5   :  { %s19_s27 = sshll.u32 %s339_s26, 4  ;;  %s340_s28 = smov 128   ;;  %s20_s27 = int_to_ptr.vmem [resolvable:$true] %s19_s27 }
   0x6   :  { %s341_s29 = smov 8   ;;  %s43_s6 = sshll.u32 %s418_s3, 4  ;;  %s44_s6 = int_to_ptr.hbm [resolvable:$true] %s43_s6 }
   0x7   :  { %25 = dma.hbm_to_vmem [thread:$0]  %s18_s25, 256, %s20_s27, [#allocation4], %s340_s28, %s340_s28, %s341_s29  }
   0x8   :  { %s342_s7 = smov [#allocation8]  }
   0x9   :  { %s45_s8 = sshll.u32 %s342_s7, 4  ;;  %s46_s8 = int_to_ptr.vmem [resolvable:$true] %s45_s8 }
   0xa   :  { %51 = dma.hbm_to_vmem [thread:$0]  %s44_s6, 2048, %s46_s8, [#allocation7], %s340_s28, %s340_s28, %s341_s29  }
   0xb   :  { %332 = dma.done.wait [#allocation4], 256  }
   0xc   :  { %333 = vsyncadd [#allocation4], 4294967040 }
   0xd   :  { %334 = dma.done.wait [#allocation7], 2064  }
   0xe   :  { %335 = vsyncadd [#allocation7], 4294965232  ;;  %v72_v0 = vlaneseq  ;;  %v70_v2 = vld [vmem:[#allocation3] sm:$0xff]  ;;  %v71_v4 = vld [vmem:[#allocation3 + $0x8] sm:$0xff]  ;;  %s192_s14 = sshll.u32 %s420_s5, 4  ;;  %s193_s14 = int_to_ptr.hbm [resolvable:$true] %s192_s14 }
   0xf   :  { %v150_v6 = vld [vmem:[#allocation8 + $0x78] sm:$0xff]  ;;  %v149_v7 = vld [vmem:[#allocation8 + $0x70] sm:$0xff]  ;;  %v148_v18 = vld [vmem:[#allocation8 + $0x68] sm:$0xff] }
  0x10   :  { %v73_v1 = vand.u32 127, %v72_v0  ;;  %159 = vmatpush.msra.mxu0 %v150_v6  ;;  %207 = vmatpush.msra.mxu1 %v150_v6  ;;  %v147_v19 = vld [vmem:[#allocation8 + $0x60] sm:$0xff]  ;;  %v146_v20 = vld [vmem:[#allocation8 + $0x58] sm:$0xff]  ;;  %v145_v21 = vld [vmem:[#allocation8 + $0x50] sm:$0xff] }
  0x11   :  { %v144_v22 = vld [vmem:[#allocation8 + $0x48] sm:$0xff]  ;;  %v143_v23 = vld [vmem:[#allocation8 + $0x40] sm:$0xff]  ;;  %v142_v24 = vld [vmem:[#allocation8 + $0x38] sm:$0xff] }
  0x12   :  { %vm74_vm0 = vcmp.lt.s32.totalorder %v73_v1, 32  ;;  %160 = vmatpush.msra.mxu0 %v149_v7  ;;  %208 = vmatpush.msra.mxu1 %v149_v7  ;;  %v141_v25 = vld [vmem:[#allocation8 + $0x30] sm:$0xff]  ;;  %v140_v26 = vld [vmem:[#allocation8 + $0x28] sm:$0xff]  ;;  %v139_v27 = vld [vmem:[#allocation8 + $0x20] sm:$0xff] }
  0x13   :  { %v75_v3 = vsel %vm74_vm0, %v70_v2, 0.0  ;;  %v76_v5 = vsel %vm74_vm0, %v71_v4, 0.0  ;;  %v138_v28 = vld [vmem:[#allocation8 + $0x18] sm:$0xff]  ;;  %v137_v29 = vld [vmem:[#allocation8 + $0x10] sm:$0xff]  ;;  %v136_v30 = vld [vmem:[#allocation8 + $0x8] sm:$0xff] }
  0x14   :  { %77 = vadd.xlane.f32.xlu0 %v75_v3  ;;  %161 = vmatpush.msra.mxu0 %v148_v18  ;;  %v135_v31 = vld [vmem:[#allocation8] sm:$0xff]  ;;  %v229_v46 = vld [vmem:[#allocation6] ss:$0 sm:$0xff]  ;;  %v230_v50 = vld [vmem:[%s417_s2] ss:$0 sm:$0xff]  ;;  %s343_s2 = smov [#allocation9]  }
  0x15   :  { %209 = vmatpush.msra.mxu1 %v148_v18  ;;  %v231_v60 = vld [vmem:[%s419_s4] ss:$0 sm:$0xff]  ;;  %s190_s11 = sshll.u32 %s343_s2, 4  ;;  %s191_s11 = int_to_ptr.vmem [resolvable:$true] %s190_s11 }
  0x16   :  { %162 = vmatpush.msra.mxu0 %v147_v19 }
  0x17   :  { %210 = vmatpush.msra.mxu1 %v147_v19 }
  0x18   :  { %163 = vmatpush.msra.mxu0 %v146_v20 }
  0x19   :  { %211 = vmatpush.msra.mxu1 %v146_v20 }
  0x1a   :  { %164 = vmatpush.msra.mxu0 %v145_v21 }
  0x1b   :  { %212 = vmatpush.msra.mxu1 %v145_v21 }
  0x1c   :  { %79 = vadd.xlane.f32.xlu0 %v76_v5  ;;  %165 = vmatpush.msra.mxu0 %v144_v22 }
  0x1d   :  { %213 = vmatpush.msra.mxu1 %v144_v22 }
  0x1e   :  { %166 = vmatpush.msra.mxu0 %v143_v23 }
  0x1f   :  { %214 = vmatpush.msra.mxu1 %v143_v23 }
  0x20   :  { %167 = vmatpush.msra.mxu0 %v142_v24 }
  0x21   :  { %215 = vmatpush.msra.mxu1 %v142_v24 }
  0x22   :  { %168 = vmatpush.msra.mxu0 %v141_v25 }
  0x23   :  { %216 = vmatpush.msra.mxu1 %v141_v25 }
  0x24   :  { %169 = vmatpush.msra.mxu0 %v140_v26 }
  0x25   :  { %217 = vmatpush.msra.mxu1 %v140_v26 }
  0x26   :  { %170 = vmatpush.msra.mxu0 %v139_v27 }
  0x27   :  { %218 = vmatpush.msra.mxu1 %v139_v27 }
  0x28   :  { %171 = vmatpush.msra.mxu0 %v138_v28 }
  0x29   :  { %219 = vmatpush.msra.mxu1 %v138_v28 }
  0x2a   :  { %172 = vmatpush.msra.mxu0 %v137_v29 }
  0x2b   :  { %220 = vmatpush.msra.mxu1 %v137_v29 }
  0x2c   :  { %173 = vmatpush.msra.mxu0 %v136_v30 }
  0x2d   :  { %221 = vmatpush.msra.mxu1 %v136_v30 }
  0x2e   :  { %174 = vmatpush.msra.mxu0 %v135_v31 }
  0x2f   :  { %222 = vmatpush.msra.mxu1 %v135_v31 }
  0x87   :  { %v78_v8 = vpop.xlane.xlu0 %77 }
  0x88   :  { %v81_v9 = vmul.f32 0.03125, %v78_v8 }
  0x8a   :  { %v83_v10 = vsub.f32 %v70_v2, %v81_v9 }
  0x8c   :  { %v392_v11 = vsel %vm74_vm0, %v83_v10, 0.0 }
  0x8d   :  { %v87_v12 = vmul.f32 %v392_v11, %v392_v11 }
  0x8f   :  { %89 = vadd.xlane.f32.xlu1 %v87_v12  ;;  %v80_v13 = vpop.xlane.xlu0 %79 }
  0x90   :  { %v82_v14 = vmul.f32 0.03125, %v80_v13 }
  0x92   :  { %v84_v15 = vsub.f32 %v71_v4, %v82_v14 }
  0x94   :  { %v397_v16 = vsel %vm74_vm0, %v84_v15, 0.0 }
  0x95   :  { %v88_v17 = vmul.f32 %v397_v16, %v397_v16 }
  0x97   :  { %91 = vadd.xlane.f32.xlu1 %v88_v17 }
 0x102   :  { %v90_v32 = vpop.xlane.xlu1 %89 }
 0x103   :  { %v93_v33 = vmul.f32 0.03125, %v90_v32 }
 0x105   :  { %v95_v34 = vadd.f32 1e-05, %v93_v33 }
 0x107   :  { %232 = vrsqrt.f32 %v95_v34  ;;  %vm103_vm2 = vweird.f32 %v95_v34 }
 0x10a   :  { %v92_v35 = vpop.xlane.xlu1 %91 }
 0x10b   :  { %v94_v36 = vmul.f32 0.03125, %v92_v35 }
 0x10d   :  { %v233_v37 = vpop.eup %232  ;;  %v96_v38 = vadd.f32 1e-05, %v94_v36 }
 0x10e   :  { %v98_v39 = vmul.f32 %v233_v37, %v95_v34  ;;  %vm104_vm1 = vweird.f32 %v233_v37 }
 0x10f   :  { %234 = vrsqrt.f32 %v96_v38  ;;  %vm105_vm3 = vmor %vm103_vm2, %vm104_vm1  ;;  %vm113_vm5 = vweird.f32 %v96_v38 }
 0x110   :  { %v99_v40 = vmul.f32 %v233_v37, %v98_v39 }
 0x112   :  { %v100_v41 = vmul.f32 0.5, %v99_v40 }
 0x114   :  { %v101_v42 = vsub.f32 1.5, %v100_v41 }
 0x115   :  { %v235_v43 = vpop.eup %234 }
 0x116   :  { %v102_v44 = vmul.f32 %v233_v37, %v101_v42  ;;  %v108_v45 = vmul.f32 %v235_v43, %v96_v38  ;;  %vm114_vm4 = vweird.f32 %v235_v43 }
 0x117   :  { %vm115_vm6 = vmor %vm113_vm5, %vm114_vm4 }
 0x118   :  { %v109_v47 = vmul.f32 %v235_v43, %v108_v45  ;;  %v106_v48 = vsel %vm105_vm3, %v233_v37, %v102_v44 }
 0x119   :  { %v117_v49 = vmul.f32 %v106_v48, %v392_v11 }
 0x11a   :  { %v110_v51 = vmul.f32 0.5, %v109_v47 }
 0x11b   :  { %v123_v52 = vmul.f32 %v229_v46, %v117_v49 }
 0x11c   :  { %v111_v53 = vsub.f32 1.5, %v110_v51 }
 0x11d   :  { %v129_v54 = vadd.f32 %v230_v50, %v123_v52 }
 0x11e   :  { %v112_v55 = vmul.f32 %v235_v43, %v111_v53 }
 0x11f   :  { %175 = vmatmul.f32.vlgmr.msra.gmra.mxu0 %v129_v54 }
 0x120   :  { %v116_v56 = vsel %vm115_vm6, %v235_v43, %v112_v55 }
 0x121   :  { %v118_v57 = vmul.f32 %v116_v56, %v397_v16 }
 0x123   :  { %v124_v58 = vmul.f32 %v229_v46, %v118_v57 }
 0x125   :  { %v130_v59 = vadd.f32 %v230_v50, %v124_v58 }
 0x127   :  { %178 = vmatmul.f32.vlgmr.msra.gmra.mxu1 %v130_v59 }
 0x19c   :  { %v176_v61 = vpop.f32.mrf.mxu0 }
 0x19d   :  { %v177_v62 = vadd.f32 %v231_v60, %v176_v61 }
 0x19f   :  { %v182_v63 = vmax.f32 %v177_v62, 0.0 }
 0x1a1   :  { %184 = vst [vmem:[#allocation9] sm:$0xff] %v182_v63 }
 0x1a4   :  { %v179_v0 = vpop.f32.mrf.mxu1 }
 0x1a5   :  { %v180_v1 = vadd.f32 %v231_v60, %v179_v0 }
 0x1a7   :  { %v183_v2 = vmax.f32 %v180_v1, 0.0 }
 0x1a9   :  { %185 = vst [vmem:[#allocation9 + $0x8] sm:$0xff] %v183_v2 }
 0x1aa   :  { %198 = dma.vmem_to_hbm [thread:$0]  %s191_s11, 256, %s193_s14, [#allocation5], %s340_s28, %s340_s28, %s341_s29  }
 0x1ab   :  { %336 = dma.done.wait [#allocation5], 256  }
 0x1ac   :  { %337 = vsyncadd [#allocation5], 4294967040 }
 0x1ad   :  { %203 = vsyncpa [#allocation4], 1 }
 0x1ae   :  { %204 = vsyncpa [#allocation7], 1 }
 0x1af   :  { %205 = vsyncpa [#allocation5], 1 }

</bundles_post_ra>
